<compile_context>
chip_gen: v7x
topology: tpu7x:2x2x1
jax: 0.10.0
libtpu: 0.0.40
codegen_flags: <defaults>
</compile_context>

<pallas_src>
import jax
import jax.numpy as jnp
from jax.experimental import pallas as pl
from jax.experimental.pallas import tpu as pltpu


def _round_up(x, m):
    return (x + m - 1) // m * m


def _device_profile():
    """Per-generation knobs (VMEM limit, target block bytes, reduction split)."""
    try:
        kind = jax.devices()[0].device_kind.lower()
    except Exception:
        kind = ""
    if "v7" in kind:
        # 64 MiB VMEM per TensorCore, ~3.2 TB/s HBM, 2 TCs per chip.
        return dict(vmem_limit=48 << 20, p1_block=10 << 20, p2_block=5 << 20, nsplit=2)
    if "v6" in kind:
        # 128 MiB VMEM, single TC: big blocks, no reduction split.
        return dict(vmem_limit=96 << 20, p1_block=14 << 20, p2_block=8 << 20, nsplit=1)
    if "v5" in kind:
        return dict(vmem_limit=64 << 20, p1_block=8 << 20, p2_block=4 << 20, nsplit=1)
    # Unknown part: conservative defaults.
    return dict(vmem_limit=48 << 20, p1_block=6 << 20, p2_block=4 << 20, nsplit=1)


# ---------------------------------------------------------------------------
# Kernels
# ---------------------------------------------------------------------------
def _make_stats_kernel(tile_n, inner, n_rows, needs_mask):
    """Pass 1: lane-dense per-channel partial sum / sum-of-squares.

    Reduction is over the leading (non-layout) axis only -> pure VPU adds,
    no XLU cross-lane work in the hot loop, no MXU. Ragged tail rows (and
    "phantom" blocks from the 2-way split) are masked in-kernel; no HBM pad.
    """
    def kernel(x_ref, sum_ref, sq_ref):
        @pl.when(pl.program_id(1) == 0)
        def _():
            sum_ref[...] = jnp.zeros_like(sum_ref)
            sq_ref[...] = jnp.zeros_like(sq_ref)

        x = x_ref[...].astype(jnp.float32)
        if needs_mask:
            blk = pl.program_id(0) * inner + pl.program_id(1)   # logical block idx
            rows_valid = n_rows - blk * tile_n                  # may be <= 0
            row_ids = jax.lax.broadcasted_iota(jnp.int32, (tile_n, 1, 1), 0)
            x = jnp.where(row_ids < rows_valid, x, 0.0)
        sum_ref[...] += jnp.sum(x, axis=0, keepdims=True)
        sq_ref[...] += jnp.sum(x * x, axis=0, keepdims=True)

    return kernel


def _normalize_kernel(x_ref, scale_ref, shift_ref, o_ref):
    """Pass 2: y = x * scale + shift; scale/shift are (C, 1), lane-broadcast."""
    x = x_ref[...].astype(jnp.float32)
    o_ref[...] = (x * scale_ref[...] + shift_ref[...]).astype(o_ref.dtype)


def _make_fused_kernel(n_count, eps):
    """Single-pass fast path when x fits in VMEM: stats + normalize fused."""
    def kernel(x_ref, gamma_ref, beta_ref, o_ref):
        x = x_ref[...].astype(jnp.float32)                       # (N, C, HW)
        # Leading-axis reduce (VPU) first, then the small lane reduce (XLU).
        s = jnp.sum(jnp.sum(x, axis=0, keepdims=True), axis=2, keepdims=True)
        sq = jnp.sum(jnp.sum(x * x, axis=0, keepdims=True), axis=2, keepdims=True)
        n = jnp.float32(n_count)
        mean = s / n                                             # (1, C, 1)
        var = jnp.maximum(sq / n - mean * mean, 0.0)             # biased, clamped
        inv_std = jax.lax.rsqrt(var + jnp.float32(eps))
        scale = gamma_ref[...] * inv_std[0]                      # (C, 1)
        shift = beta_ref[...] - mean[0] * scale                  # (C, 1)
        o_ref[...] = (x * scale + shift).astype(o_ref.dtype)

    return kernel


# ---------------------------------------------------------------------------
# Wrapper
# ---------------------------------------------------------------------------
def my_batchnorm3d(x, gamma, beta, eps=1e-5, *, force_two_pass=False,
                   _tile_override=None, _nsplit_override=None):
    """Forward pass of myBatchNorm3d (training-mode batch statistics).

    x: (T, B, C, H, W).  gamma/beta: (C,).
    """
    T, B, C, H, W = x.shape
    N, HW = T * B, H * W

    # Free, contiguous view: channel on sublanes, flattened spatial on lanes.
    x3 = x.reshape(N, C, HW)
    isz = jnp.dtype(x.dtype).itemsize
    x_bytes = N * C * HW * isz

    prof = _device_profile()
    vmem_limit = int(prof["vmem_limit"])

    # Padded (sublane, lane) footprint of one (C, HW) slab in VMEM.
    sublane = 8 * max(1, 4 // isz)                 # 8 for f32, 16 for bf16, ...
    slab = _round_up(C, sublane) * _round_up(HW, 128)
    slab_in = slab * isz
    slab_f32 = slab * 4

    gamma_f = gamma.astype(jnp.float32)
    beta_f = beta.astype(jnp.float32)

    # ------------- Fused x-resident fast path (2x HBM traffic) -------------
    fused_need = N * (2 * slab_in + 2 * slab_in + 2 * slab_f32)   # in + out + f32 tmps
    if (not force_two_pass) and fused_need <= vmem_limit // 2:
        y3 = pl.pallas_call(
            _make_fused_kernel(N * HW, eps),
            out_shape=jax.ShapeDtypeStruct((N, C, HW), x.dtype),
            grid_spec=pltpu.PrefetchScalarGridSpec(
                num_scalar_prefetch=0,
                grid=(1,),
                in_specs=[pl.BlockSpec((N, C, HW), lambda i: (0, 0, 0)),
                          pl.BlockSpec((C, 1), lambda i: (0, 0)),
                          pl.BlockSpec((C, 1), lambda i: (0, 0))],
                out_specs=pl.BlockSpec((N, C, HW), lambda i: (0, 0, 0)),
            ),
            compiler_params=pltpu.CompilerParams(
                dimension_semantics=("arbitrary",),
                vmem_limit_bytes=vmem_limit),
            cost_estimate=pl.CostEstimate(
                flops=5 * N * C * HW, transcendentals=C,
                bytes_accessed=2 * x_bytes),
        )(x3, gamma_f.reshape(C, 1), beta_f.reshape(C, 1))
        return y3.reshape(T, B, C, H, W)

    # ----------------------------- Two-pass path ----------------------------
    budget = int(vmem_limit * 0.7)
    # Pass 1 streams only the input; accumulators are resident.
    per_row1 = 2 * slab_in + 2 * slab_f32          # 2x double-buffered in + f32 temps
    fixed1 = 4 * slab_f32                          # resident sum/sq accumulators
    tile_n1 = min(N,
                  max(1, (budget - fixed1) // per_row1),
                  max(1, prof["p1_block"] // slab_in))
    # Pass 2 double-buffers both an input and an output block.
    per_row2 = 4 * slab_in + slab_f32
    tile_n2 = min(N,
                  max(1, budget // per_row2),
                  max(1, prof["p2_block"] // slab_in))
    if _tile_override is not None:
        tile_n1, tile_n2 = (max(1, min(N, int(t))) for t in _tile_override)

    grid_n1 = pl.cdiv(N, tile_n1)
    nsplit = prof["nsplit"] if _nsplit_override is None else int(_nsplit_override)
    nsplit = max(1, min(nsplit, grid_n1))
    inner = pl.cdiv(grid_n1, nsplit)
    last_blk = grid_n1 - 1
    # Mask needed if the logical grid over-covers N (ragged tail / phantom blocks).
    needs_mask = (nsplit * inner * tile_n1) != N

    # ---- Pass 1: per-channel lane-dense partial sum / sum-of-squares ----
    partial_sums, partial_sqs = pl.pallas_call(
        _make_stats_kernel(tile_n1, inner, N, needs_mask),
        out_shape=(jax.ShapeDtypeStruct((nsplit, C, HW), jnp.float32),
                   jax.ShapeDtypeStruct((nsplit, C, HW), jnp.float32)),
        grid_spec=pltpu.PrefetchScalarGridSpec(
            num_scalar_prefetch=0,
            grid=(nsplit, inner),
            # Clamp phantom logical blocks to the last real block; the kernel
            # masks their contribution to exactly zero.
            in_specs=[pl.BlockSpec(
                (tile_n1, C, HW),
                lambda c, i: (jnp.minimum(c * inner + i, last_blk), 0, 0))],
            out_specs=(pl.BlockSpec((1, C, HW), lambda c, i: (c, 0, 0)),
                       pl.BlockSpec((1, C, HW), lambda c, i: (c, 0, 0))),
        ),
        compiler_params=pltpu.CompilerParams(
            dimension_semantics=("parallel", "arbitrary"),
            vmem_limit_bytes=vmem_limit),
        cost_estimate=pl.CostEstimate(
            flops=3 * N * C * HW, transcendentals=0,
            bytes_accessed=x_bytes + 2 * nsplit * C * HW * 4),
    )(x3)

    # Tiny (C,)-sized math stays in plain JAX (glue).
    sums = jnp.sum(partial_sums, axis=(0, 2))                # (C,)
    sqs = jnp.sum(partial_sqs, axis=(0, 2))                  # (C,)
    n = jnp.float32(N * HW)                                  # true element count
    mean = sums / n
    # TODO(synk): E[x^2]-E[x]^2 is cancellation-prone if |mean| >> std; clamp keeps it finite.
    var = jnp.maximum(sqs / n - mean * mean, 0.0)            # biased variance
    inv_std = jax.lax.rsqrt(var + jnp.float32(eps))
    scale_c = gamma_f * inv_std                              # (C,)
    shift_c = beta_f - mean * scale_c                        # (C,)
    scale = scale_c[:, None]                                 # (C, 1) lane-broadcast in-kernel
    shift = shift_c[:, None]

    # ---- Pass 2: fused elementwise normalize + affine (lane-dense output) ----
    grid_n2 = pl.cdiv(N, tile_n2)
    y3 = pl.pallas_call(
        _normalize_kernel,
        out_shape=jax.ShapeDtypeStruct((N, C, HW), x.dtype),
        grid_spec=pltpu.PrefetchScalarGridSpec(
            num_scalar_prefetch=0,
            grid=(grid_n2,),
            in_specs=[pl.BlockSpec((tile_n2, C, HW), lambda i: (i, 0, 0)),
                      pl.BlockSpec((C, 1), lambda i: (0, 0)),
                      pl.BlockSpec((C, 1), lambda i: (0, 0))],
            # Ragged last block: out-of-bounds output writes are dropped by the
            # pipeline, so no pad/slice copies are needed.
            out_specs=pl.BlockSpec((tile_n2, C, HW), lambda i: (i, 0, 0)),
        ),
        compiler_params=pltpu.CompilerParams(
            dimension_semantics=("parallel",),
            vmem_limit_bytes=vmem_limit),
        cost_estimate=pl.CostEstimate(
            flops=2 * N * C * HW, transcendentals=0,
            bytes_accessed=2 * x_bytes + 2 * C * 4),
    )(x3, scale, shift)

    # Free reshape back to (T, B, C, H, W); no transposes, no pad/slice copies.
    return y3.reshape(T, B, C, H, W)


def _reference(x, gamma, beta, eps=1e-5):
    # Pure-JAX reference matching BatchNorm3d training-mode forward on the
    # permuted tensor (normalize over all axes except the channel axis 2).
    axes = (0, 1, 3, 4)
    mean = jnp.mean(x, axis=axes, keepdims=True)
    var = jnp.mean((x - mean) ** 2, axis=axes, keepdims=True)   # biased
    g = gamma.reshape(1, 1, -1, 1, 1)
    b = beta.reshape(1, 1, -1, 1, 1)
    return g * (x - mean) / jnp.sqrt(var + eps) + b


if __name__ == "__main__":
    # Small shapes implied by the module: (T=step, B, C=num_features, H, W).
    # H*W = 256 keeps the lane (last) dimension a multiple of 128.
    T, B, C, H, W = 4, 2, 4, 16, 16
    key = jax.random.PRNGKey(0)
    kx, kg, kb = jax.random.split(key, 3)
    x = jax.random.normal(kx, (T, B, C, H, W), dtype=jnp.float32)

    # nn.BatchNorm3d default init is gamma=1, beta=0; perturb slightly to
    # exercise the affine path (same forward semantics).
    gamma = 1.0 + 0.1 * jax.random.normal(kg, (C,), dtype=jnp.float32)
    beta = 0.1 * jax.random.normal(kb, (C,), dtype=jnp.float32)

    y_ref = _reference(x, gamma, beta)

    # 1) Auto dispatch: small activation -> fused x-resident single pass.
    y_fused = jax.block_until_ready(my_batchnorm3d(x, gamma, beta))
    assert y_fused.shape == x.shape
    assert jnp.allclose(y_fused, y_ref, atol=1e-4, rtol=1e-4), "fused path mismatch"

    # 2) General two-pass path with ragged tiles (in-kernel tail masking,
    #    dropped OOB output writes) and a forced 2-way reduction split
    #    (exercises the clamped "phantom block" path used on v7x).
    y_two = jax.block_until_ready(
        my_batchnorm3d(x, gamma, beta, force_two_pass=True,
                       _tile_override=(3, 3), _nsplit_override=2))
    assert jnp.allclose(y_two, y_ref, atol=1e-4, rtol=1e-4), "two-pass (ragged) mismatch"

    # 3) Two-pass path with auto tile sizing (evenly divisible, no masking).
    y_two2 = jax.block_until_ready(
        my_batchnorm3d(x, gamma, beta, force_two_pass=True))
    assert jnp.allclose(y_two2, y_ref, atol=1e-4, rtol=1e-4), "two-pass (auto) mismatch"

    print("KERNEL_OK")
</pallas_src>

<mosaic_0001>
module attributes {stable_mosaic.version = 11 : i64} {
  func.func @kernel(%arg0: i32, %arg1: memref<8x4x256xf32, #tpu.memory_space<vmem>>, %arg2: memref<4x1xf32, #tpu.memory_space<vmem>>, %arg3: memref<4x1xf32, #tpu.memory_space<vmem>>, %arg4: memref<8x4x256xf32, #tpu.memory_space<vmem>>) attributes {dimension_semantics = [#tpu.dimension_semantics<arbitrary>], iteration_bounds = array<i64: 1>, scalar_prefetch = 0 : i64, scratch_operands = 0 : i64, tpu.core_type = #tpu.core_type<tc>, window_params = [{pipeline_mode = #tpu.pipeline_mode<synchronous>, transform_indices = @transform_0, window_bounds = array<i64: 8, 4, 256>}, {pipeline_mode = #tpu.pipeline_mode<synchronous>, transform_indices = @transform_1, window_bounds = array<i64: 4, 1>}, {pipeline_mode = #tpu.pipeline_mode<synchronous>, transform_indices = @transform_2, window_bounds = array<i64: 4, 1>}, {pipeline_mode = #tpu.pipeline_mode<synchronous>, transform_indices = @transform_3, window_bounds = array<i64: 8, 4, 256>}]} {
    %c0 = arith.constant 0 : index
    %c0_0 = arith.constant 0 : index
    %c0_1 = arith.constant 0 : index
    %0 = vector.load %arg1[%c0, %c0_0, %c0_1] : memref<8x4x256xf32, #tpu.memory_space<vmem>>, vector<8x4x256xf32>
    %cst = arith.constant dense<0.000000e+00> : vector<4x256xf32>
    %1 = vector.multi_reduction <add>, %0, %cst [0] : vector<8x4x256xf32> to vector<4x256xf32>
    %2 = vector.shape_cast %1 : vector<4x256xf32> to vector<1x4x256xf32>
    %cst_2 = arith.constant dense<0.000000e+00> : vector<1x4xf32>
    %3 = vector.multi_reduction <add>, %2, %cst_2 [2] : vector<1x4x256xf32> to vector<1x4xf32>
    %4 = vector.shape_cast %3 : vector<1x4xf32> to vector<1x4x1xf32>
    %5 = arith.mulf %0, %0 : vector<8x4x256xf32>
    %cst_3 = arith.constant dense<0.000000e+00> : vector<4x256xf32>
    %6 = vector.multi_reduction <add>, %5, %cst_3 [0] : vector<8x4x256xf32> to vector<4x256xf32>
    %7 = vector.shape_cast %6 : vector<4x256xf32> to vector<1x4x256xf32>
    %cst_4 = arith.constant dense<0.000000e+00> : vector<1x4xf32>
    %8 = vector.multi_reduction <add>, %7, %cst_4 [2] : vector<1x4x256xf32> to vector<1x4xf32>
    %9 = vector.shape_cast %8 : vector<1x4xf32> to vector<1x4x1xf32>
    %cst_5 = arith.constant 2.048000e+03 : f32
    %10 = vector.broadcast %cst_5 : f32 to vector<1x4x1xf32>
    %11 = arith.divf %4, %10 : vector<1x4x1xf32>
    %cst_6 = arith.constant 2.048000e+03 : f32
    %12 = vector.broadcast %cst_6 : f32 to vector<1x4x1xf32>
    %13 = arith.divf %9, %12 : vector<1x4x1xf32>
    %14 = arith.mulf %11, %11 : vector<1x4x1xf32>
    %15 = arith.subf %13, %14 : vector<1x4x1xf32>
    %cst_7 = arith.constant 0.000000e+00 : f32
    %16 = vector.broadcast %cst_7 : f32 to vector<1x4x1xf32>
    %17 = arith.maximumf %15, %16 : vector<1x4x1xf32>
    %cst_8 = arith.constant 9.99999974E-6 : f32
    %18 = vector.broadcast %cst_8 : f32 to vector<1x4x1xf32>
    %19 = arith.addf %17, %18 : vector<1x4x1xf32>
    %20 = math.rsqrt %19 : vector<1x4x1xf32>
    %c0_9 = arith.constant 0 : index
    %c0_10 = arith.constant 0 : index
    %21 = vector.load %arg2[%c0_9, %c0_10] : memref<4x1xf32, #tpu.memory_space<vmem>>, vector<4x1xf32>
    %22 = vector.shape_cast %20 : vector<1x4x1xf32> to vector<4x1xf32>
    %23 = arith.mulf %21, %22 : vector<4x1xf32>
    %c0_11 = arith.constant 0 : index
    %c0_12 = arith.constant 0 : index
    %24 = vector.load %arg3[%c0_11, %c0_12] : memref<4x1xf32, #tpu.memory_space<vmem>>, vector<4x1xf32>
    %25 = vector.shape_cast %11 : vector<1x4x1xf32> to vector<4x1xf32>
    %26 = arith.mulf %25, %23 : vector<4x1xf32>
    %27 = arith.subf %24, %26 : vector<4x1xf32>
    %28 = vector.shape_cast %23 : vector<4x1xf32> to vector<1x4x1xf32>
    %29 = vector.broadcast %28 : vector<1x4x1xf32> to vector<8x4x256xf32>
    %30 = arith.mulf %0, %29 : vector<8x4x256xf32>
    %31 = vector.shape_cast %27 : vector<4x1xf32> to vector<1x4x1xf32>
    %32 = vector.broadcast %31 : vector<1x4x1xf32> to vector<8x4x256xf32>
    %33 = arith.addf %30, %32 : vector<8x4x256xf32>
    %c0_13 = arith.constant 0 : index
    %c0_14 = arith.constant 0 : index
    %c0_15 = arith.constant 0 : index
    %34 = vector.load %arg4[%c0_13, %c0_14, %c0_15] : memref<8x4x256xf32, #tpu.memory_space<vmem>>, vector<8x4x256xf32>
    tpu.vector_store %arg4[%c0_13, %c0_14, %c0_15], %33 {strides = array<i32>} : memref<8x4x256xf32, #tpu.memory_space<vmem>>, vector<8x4x256xf32>,
    return
  }
  func.func @transform_0(%arg0: i32) -> (i32, i32, i32) {
    %c0_i32 = arith.constant 0 : i32
    %c0_i32_0 = arith.constant 0 : i32
    %c0_i32_1 = arith.constant 0 : i32
    %c0_i32_2 = arith.constant 0 : i32
    return %c0_i32, %c0_i32_0, %c0_i32_1 : i32, i32, i32
  }
  func.func @transform_1(%arg0: i32) -> (i32, i32) {
    %c0_i32 = arith.constant 0 : i32
    %c0_i32_0 = arith.constant 0 : i32
    %c0_i32_1 = arith.constant 0 : i32
    return %c0_i32, %c0_i32_0 : i32, i32
  }
  func.func @transform_2(%arg0: i32) -> (i32, i32) {
    %c0_i32 = arith.constant 0 : i32
    %c0_i32_0 = arith.constant 0 : i32
    %c0_i32_1 = arith.constant 0 : i32
    return %c0_i32, %c0_i32_0 : i32, i32
  }
  func.func @transform_3(%arg0: i32) -> (i32, i32, i32) {
    %c0_i32 = arith.constant 0 : i32
    %c0_i32_0 = arith.constant 0 : i32
    %c0_i32_1 = arith.constant 0 : i32
    %c0_i32_2 = arith.constant 0 : i32
    return %c0_i32, %c0_i32_0, %c0_i32_1 : i32, i32, i32
  }
}

</mosaic_0001>

<bundles_post_ra>
// kernel: tpu_custom_call.1
= control target key start
LH: loop header
LB: loop body
LE: loop exit
PB: predicated region body
PF: predicated region fallthrough
CT: control target
= control target key end

     0   :  { %8 = vsyncpa [#allocation3], 0  ;;  %s470_s0 = inlined_call_operand.hbm [shape: f32[8,4,256], index: 0, kind: input, shape index: {}]   ;;  %s471_s1 = inlined_call_operand.vmem [shape: f32[4,1], index: 1, kind: input, shape index: {}]   ;;  %s472_s2 = inlined_call_operand.vmem [shape: f32[4,1], index: 2, kind: input, shape index: {}]   ;;  %s473_s3 = inlined_call_operand.hbm [shape: f32[8,4,256], index: 3, kind: output, shape index: {}]  }
   0x1   :  { %9 = vsyncpa [#allocation4], 0  ;;  %s308_s12 = smov [#allocation2]   ;;  %s260_s16 = scalar_lea.hbm %s470_s0, 1024 }
   0x2   :  { %s15_s13 = sshll.u32 %s308_s12, 4  ;;  %p261_p0 = scmp.ne.s32.totalorder %s470_s0, %s260_s16  ;;  %s16_s13 = int_to_ptr.vmem [resolvable:$true] %s15_s13 }
   0x3   :  { %p264_p1 = scmp.lt.u32.totalorder %s260_s16, %s470_s0 }
   0x5   :  { %p266_p2 = pnand %p264_p1, %p261_p0 }
   0x7   :  { %269 = shalt.err (!%p266_p2)
}
   0x8   :  { %s270_s21 = scalar_lea.vmem %s16_s13, 1024  ;;  %p275_p4 = scmp.lt.s32.totalorder %s16_s13, %s16_s13 }
   0x9   :  { %p271_p3 = scmp.ne.s32.totalorder %s16_s13, %s270_s21  ;;  %p276_p5 = scmp.lt.s32.totalorder %s270_s21, %s270_s21 }
   0xb   :  { %p277_p6 = por %p276_p5, %p275_p4 }
   0xd   :  { %p278_p7 = pnand %p277_p6, %p271_p3 }
   0xf   :  { %281 = shalt.err (!%p278_p7)
}
  0x10   :  { %s309_s22 = smov 128   ;;  %s310_s23 = smov 8  }
  0x11   :  { %21 = dma.hbm_to_vmem [thread:$0]  %s470_s0, 1024, %s16_s13, [#allocation3], %s309_s22, %s309_s22, %s310_s23  }
  0x12   :  { %304 = dma.done.wait [#allocation3], 1024  }
  0x13   :  { %305 = vsyncadd [#allocation3], 4294966272  ;;  %vm61_vm0 = vcmask 1043456   ;;  %v349_v0 = vld [vmem:[#allocation2] sm:$0xff]  ;;  %v351_v1 = vld [vmem:[#allocation2 + $0x8] sm:$0xff] }
  0x14   :  { %v353_v2 = vld [vmem:[#allocation2 + $0x10] sm:$0xff]  ;;  %v355_v3 = vld [vmem:[#allocation2 + $0x18] sm:$0xff]  ;;  %v45_v4 = vcombine.high %v349_v0, %v349_v0  ;;  %v46_v5 = vcombine.high %v351_v1, %v351_v1  ;;  %v62_v6 = vsel %vm61_vm0, %v349_v0, 0.0  ;;  %v363_v7 = vld [vmem:[#allocation2 + $0x20] sm:$0xff]  ;;  %v63_v9 = vsel %vm61_vm0, %v351_v1, 0.0 }
  0x15   :  { %v47_v8 = vcombine.high %v353_v2, %v353_v2  ;;  %v48_v10 = vcombine.high %v355_v3, %v355_v3  ;;  %v64_v11 = vadd.f32 %v63_v9, %v62_v6  ;;  %v65_v12 = vsel %vm61_vm0, %v353_v2, 0.0  ;;  %v373_v13 = vld [vmem:[#allocation2 + $0x28] sm:$0xff]  ;;  %v375_v14 = vld [vmem:[#allocation2 + $0x30] sm:$0xff]  ;;  %v386_v23 = vld [vmem:[#allocation2 + $0x38] sm:$0xff] }
  0x16   :  { %v67_v15 = vsel %vm61_vm0, %v355_v3, 0.0  ;;  %v49_v16 = vcombine.high %v363_v7, %v363_v7  ;;  %v77_v18 = vsel %vm61_vm0, %v45_v4, 0.0  ;;  %v78_v19 = vsel %vm61_vm0, %v46_v5, 0.0 }
  0x17   :  { %v66_v17 = vadd.f32 %v65_v12, %v64_v11  ;;  %v69_v20 = vsel %vm61_vm0, %v363_v7, 0.0  ;;  %v79_v21 = vadd.f32 %v78_v19, %v77_v18  ;;  %v80_v22 = vsel %vm61_vm0, %v47_v8, 0.0 }
  0x18   :  { %v50_v24 = vcombine.high %v373_v13, %v373_v13  ;;  %v51_v25 = vcombine.high %v375_v14, %v375_v14  ;;  %v82_v27 = vsel %vm61_vm0, %v48_v10, 0.0  ;;  %v71_v28 = vsel %vm61_vm0, %v373_v13, 0.0 }
  0x19   :  { %v68_v26 = vadd.f32 %v67_v15, %v66_v17  ;;  %v81_v29 = vadd.f32 %v80_v22, %v79_v21  ;;  %v97_v30 = vmul.f32 %v349_v0, %v349_v0  ;;  %v98_v31 = vmul.f32 %v351_v1, %v351_v1 }
  0x1a   :  { %v84_v33 = vsel %vm61_vm0, %v49_v16, 0.0  ;;  %v99_v34 = vmul.f32 %v353_v2, %v353_v2  ;;  %v52_v35 = vcombine.high %v386_v23, %v386_v23  ;;  %v73_v36 = vsel %vm61_vm0, %v375_v14, 0.0 }
  0x1b   :  { %v70_v32 = vadd.f32 %v69_v20, %v68_v26  ;;  %v75_v37 = vsel %vm61_vm0, %v386_v23, 0.0  ;;  %v83_v38 = vadd.f32 %v82_v27, %v81_v29  ;;  %v86_v40 = vsel %vm61_vm0, %v50_v24, 0.0 }
  0x1c   :  { %v88_v41 = vsel %vm61_vm0, %v51_v25, 0.0  ;;  %v100_v42 = vmul.f32 %v355_v3, %v355_v3  ;;  %v101_v44 = vmul.f32 %v363_v7, %v363_v7  ;;  %v113_v45 = vcombine.high %v97_v30, %v97_v30 }
  0x1d   :  { %v72_v39 = vadd.f32 %v71_v28, %v70_v32  ;;  %v85_v43 = vadd.f32 %v84_v33, %v83_v38  ;;  %v114_v46 = vcombine.high %v98_v31, %v98_v31  ;;  %v115_v48 = vcombine.high %v99_v34, %v99_v34 }
  0x1e   :  { %v129_v49 = vsel %vm61_vm0, %v97_v30, 0.0  ;;  %v130_v50 = vsel %vm61_vm0, %v98_v31, 0.0  ;;  %v90_v52 = vsel %vm61_vm0, %v52_v35, 0.0  ;;  %v132_v54 = vsel %vm61_vm0, %v99_v34, 0.0 }
  0x1f   :  { %v74_v47 = vadd.f32 %v73_v36, %v72_v39  ;;  %v87_v51 = vadd.f32 %v86_v40, %v85_v43  ;;  %v131_v53 = vadd.f32 %v130_v50, %v129_v49  ;;  %v102_v56 = vmul.f32 %v373_v13, %v373_v13 }
  0x20   :  { %v116_v57 = vcombine.high %v100_v42, %v100_v42  ;;  %v134_v58 = vsel %vm61_vm0, %v100_v42, 0.0  ;;  %v103_v60 = vmul.f32 %v375_v14, %v375_v14  ;;  %v144_v62 = vsel %vm61_vm0, %v113_v45, 0.0 }
  0x21   :  { %v76_v55 = vadd.f32 %v75_v37, %v74_v47  ;;  %v89_v59 = vadd.f32 %v88_v41, %v87_v51  ;;  %v133_v61 = vadd.f32 %v132_v54, %v131_v53  ;;  %v117_v63 = vcombine.high %v101_v44, %v101_v44  ;;  %v172_v51 = vld [vmem:[%s471_s1] sm:$0xf]  ;;  %s313_s1 = smov [#allocation5]  }
  0x22   :  { %v136_v4 = vsel %vm61_vm0, %v101_v44, 0.0  ;;  %v145_v5 = vsel %vm61_vm0, %v114_v46, 0.0  ;;  %v147_v6 = vsel %vm61_vm0, %v115_v48, 0.0  ;;  %v104_v12 = vmul.f32 %v386_v23, %v386_v23  ;;  %v174_v54 = vld [vmem:[%s472_s2] sm:$0xf]  ;;  %s230_s2 = sshll.u32 %s313_s1, 4  ;;  %s231_s2 = int_to_ptr.vmem [resolvable:$true] %s230_s2 }
  0x23   :  { %v91_v8 = vadd.f32 %v90_v52, %v89_v59  ;;  %v92_v9 = vsel %vm61_vm0, %v76_v55, 0.0  ;;  %v135_v10 = vadd.f32 %v134_v58, %v133_v61  ;;  %v146_v11 = vadd.f32 %v145_v5, %v144_v62  ;;  %s282_s29 = scalar_lea.vmem %s231_s2, 1024  ;;  %p287_p9 = scmp.lt.s32.totalorder %s231_s2, %s231_s2 }
  0x24   :  { %v118_v15 = vcombine.high %v102_v56, %v102_v56  ;;  %v138_v16 = vsel %vm61_vm0, %v102_v56, 0.0  ;;  %v149_v17 = vsel %vm61_vm0, %v116_v57, 0.0  ;;  %v119_v22 = vcombine.high %v103_v60, %v103_v60  ;;  %p283_p8 = scmp.ne.s32.totalorder %s231_s2, %s282_s29  ;;  %p288_p10 = scmp.lt.s32.totalorder %s282_s29, %s282_s29 }
  0x25   :  { %v93_v18 = vsel %vm61_vm0, %v91_v8, 0.0  ;;  %v137_v19 = vadd.f32 %v136_v4, %v135_v10  ;;  %v148_v20 = vadd.f32 %v147_v6, %v146_v11  ;;  %v140_v24 = vsel %vm61_vm0, %v103_v60, 0.0 }
  0x26   :  { %v94_v21 = vadd.f32 %v93_v18, %v92_v9  ;;  %v151_v25 = vsel %vm61_vm0, %v117_v63, 0.0  ;;  %v120_v28 = vcombine.high %v104_v12, %v104_v12  ;;  %v142_v29 = vsel %vm61_vm0, %v104_v12, 0.0  ;;  %p289_p11 = por %p288_p10, %p287_p9 }
  0x27   :  { %v139_v26 = vadd.f32 %v138_v16, %v137_v19  ;;  %v150_v27 = vadd.f32 %v149_v17, %v148_v20  ;;  %v153_v30 = vsel %vm61_vm0, %v118_v15, 0.0  ;;  %v155_v33 = vsel %vm61_vm0, %v119_v22, 0.0 }
  0x28   :  { %95 = vadd.xlane.f32.xlu0 %v94_v21  ;;  %v157_v36 = vsel %vm61_vm0, %v120_v28, 0.0  ;;  %v311_v42 = vmov 0   ;;  %v312_v57 = vmov 839922192   ;;  %v184_v59 = vlaneseq  ;;  %p290_p12 = pnand %p289_p11, %p283_p8 }
  0x29   :  { %v141_v31 = vadd.f32 %v140_v24, %v139_v26  ;;  %v152_v32 = vadd.f32 %v151_v25, %v150_v27  ;;  %248 = vset.pattern.permute.xlu1 %v311_v42  ;;  %249 = vset.pattern.permute.xlu0 %v311_v42  ;;  %v182_v58 = vunpack.c.l.s4 %v312_v57 }
  0x2a   :  { %v185_v61 = vshrl.u32 %v184_v59, 7 }
  0x2b   :  { %v143_v34 = vadd.f32 %v142_v29, %v141_v31  ;;  %v154_v35 = vadd.f32 %v153_v30, %v152_v32  ;;  %v183_v60 = vunpack.c.0.s8 %v182_v58 }
  0x2d   :  { %v156_v37 = vadd.f32 %v155_v33, %v154_v35  ;;  %v159_v39 = vsel %vm61_vm0, %v143_v34, 0.0  ;;  %v186_v62 = vsub.s32 %v183_v60, %v185_v61 }
  0x2f   :  { %v158_v38 = vadd.f32 %v157_v36, %v156_v37 }
  0x31   :  { %v160_v40 = vsel %vm61_vm0, %v158_v38, 0.0 }
  0x32   :  { %v161_v41 = vadd.f32 %v160_v40, %v159_v39 }
  0x34   :  { %162 = vadd.xlane.f32.xlu0 %v161_v41 }
  0xb5   :  { %v96_v43 = vpop.xlane.xlu0 %95 }
  0xb6   :  { %v165_v44 = vmul.f32 0.00048828125, %v96_v43 }
  0xb8   :  { %v167_v46 = vmul.f32 %v165_v44, %v165_v44 }
  0xc1   :  { %v163_v45 = vpop.xlane.xlu0 %162 }
  0xc2   :  { %v166_v47 = vmul.f32 0.00048828125, %v163_v45 }
  0xc4   :  { %v168_v48 = vsub.f32 %v166_v47, %v167_v46 }
  0xc6   :  { %v169_v49 = vmax.f32 %v168_v48, 0.0 }
  0xc8   :  { %v170_v50 = vadd.f32 1e-05, %v169_v49 }
  0xca   :  { %258 = vrsqrt.f32 %v170_v50 }
  0xd4   :  { %v259_v52 = vpop.eup %258 }
  0xd5   :  { %v173_v53 = vmul.f32 %v259_v52, %v172_v51 }
  0xd7   :  { %179 = vperm.xlu1 %248, %v173_v53   ;;  %v175_v55 = vmul.f32 %v173_v53, %v165_v44 }
  0xd9   :  { %v176_v56 = vsub.f32 %v174_v54, %v175_v55 }
  0xdb   :  { %199 = vperm.xlu1 %248, %v176_v56  }
 0x156   :  { %v180_v63 = vpop.permute.xlu1 %179 }
 0x157   :  { %v187_v4 = vrot.slane %v180_v63, %v186_v62 }
 0x159   :  { %v189_v6 = vmul.f32 %v187_v4, %v349_v0  ;;  %v190_v9 = vmul.f32 %v187_v4, %v351_v1  ;;  %v191_v10 = vmul.f32 %v187_v4, %v353_v2  ;;  %v192_v11 = vmul.f32 %v187_v4, %v355_v3 }
 0x15a   :  { %v200_v5 = vpop.permute.xlu1 %199  ;;  %v193_v12 = vmul.f32 %v187_v4, %v363_v7  ;;  %v194_v15 = vmul.f32 %v187_v4, %v373_v13  ;;  %v195_v16 = vmul.f32 %v187_v4, %v375_v14  ;;  %v196_v17 = vmul.f32 %v187_v4, %v386_v23 }
 0x15b   :  { %v207_v8 = vrot.slane %v200_v5, %v186_v62 }
 0x15d   :  { %v209_v18 = vadd.f32 %v207_v8, %v189_v6  ;;  %v210_v19 = vadd.f32 %v207_v8, %v190_v9  ;;  %v211_v0 = vadd.f32 %v207_v8, %v191_v10  ;;  %v212_v20 = vadd.f32 %v207_v8, %v192_v11 }
 0x15e   :  { %v213_v21 = vadd.f32 %v207_v8, %v193_v12  ;;  %v214_v1 = vadd.f32 %v207_v8, %v194_v15  ;;  %v215_v22 = vadd.f32 %v207_v8, %v195_v16  ;;  %v216_v2 = vadd.f32 %v207_v8, %v196_v17 }
 0x15f   :  { %217 = vst [vmem:[#allocation5] sm:$0xff] %v209_v18  ;;  %218 = vst [vmem:[#allocation5 + $0x8] sm:$0xff] %v210_v19 }
 0x160   :  { %219 = vst [vmem:[#allocation5 + $0x10] sm:$0xff] %v211_v0  ;;  %220 = vst [vmem:[#allocation5 + $0x18] sm:$0xff] %v212_v20 }
 0x161   :  { %221 = vst [vmem:[#allocation5 + $0x20] sm:$0xff] %v213_v21  ;;  %222 = vst [vmem:[#allocation5 + $0x28] sm:$0xff] %v214_v1 }
 0x162   :  { %223 = vst [vmem:[#allocation5 + $0x30] sm:$0xff] %v215_v22  ;;  %224 = vst [vmem:[#allocation5 + $0x38] sm:$0xff] %v216_v2 }
 0x163   :  { %293 = shalt.err (!%p290_p12)
}
 0x164   :  { %s294_s5 = scalar_lea.hbm %s473_s3, 1024 }
 0x165   :  { %p295_p13 = scmp.ne.s32.totalorder %s473_s3, %s294_s5  ;;  %p298_p0 = scmp.lt.u32.totalorder %s294_s5, %s473_s3 }
 0x167   :  { %p300_p1 = pnand %p298_p0, %p295_p13 }
 0x169   :  { %303 = shalt.err (!%p300_p1)
}
 0x16a   :  { %236 = dma.vmem_to_hbm [thread:$0]  %s231_s2, 1024, %s473_s3, [#allocation4], %s309_s22, %s309_s22, %s310_s23  }
 0x16b   :  { %306 = dma.done.wait [#allocation4], 1024  }
 0x16c   :  { %307 = vsyncadd [#allocation4], 4294966272 }
 0x16d   :  { %240 = vsyncpa [#allocation3], 1 }
 0x16e   :  { %241 = vsyncpa [#allocation4], 1 }

</bundles_post_ra>
